<compile_context>
chip_gen: v7x
topology: tpu7x:2x2x1
jax: 0.10.0
libtpu: 0.0.40
codegen_flags: <defaults>
</compile_context>

<pallas_src>
import functools

import jax
import jax.numpy as jnp
from jax.experimental import pallas as pl
from jax.experimental.pallas import tpu as pltpu


def _round_up(x, m):
    return (x + m - 1) // m * m


def _pool_kernel(x_ref, out_ref, sum_acc, max_acc, *, hw_total, hw_tile,
                 mask_hw):
    # x_ref:   (r_t, hw_t) block of the (R, HW) slab (R = N*C)
    # out_ref: (2, r_t)    [row 0 = avg, row 1 = max] — lane-dense output
    # sum_acc/max_acc: (r_t, 1) f32 running accumulators (VMEM scratch)
    k = pl.program_id(1)
    last_k = pl.num_programs(1) - 1

    @pl.when(k == 0)
    def _init():
        sum_acc[...] = jnp.zeros_like(sum_acc)
        max_acc[...] = jnp.full_like(max_acc, -jnp.inf)

    xv = x_ref[...].astype(jnp.float32)   # f32 accumulation (matches reference)

    def _accum(x_sum, x_max):
        sum_acc[...] += jnp.sum(x_sum, axis=-1, keepdims=True)
        max_acc[...] = jnp.maximum(max_acc[...],
                                   jnp.max(x_max, axis=-1, keepdims=True))

    if mask_hw:
        # Only the last spatial block is ragged; keep every other step
        # completely mask-free (no iota / compare / select in the hot loop).
        @pl.when(k != last_k)
        def _full():
            _accum(xv, xv)

        @pl.when(k == last_k)
        def _ragged():
            # Unpadded input => out-of-bounds lanes hold unspecified VMEM
            # contents, so BOTH the sum and the max must be masked here.
            col = k * hw_tile + jax.lax.broadcasted_iota(jnp.int32, xv.shape, 1)
            valid = col < hw_total
            _accum(jnp.where(valid, xv, 0.0), jnp.where(valid, xv, -jnp.inf))
    else:
        _accum(xv, xv)

    @pl.when(k == last_k)
    def _finalize():
        inv_hw = jnp.float32(1.0 / hw_total)
        # (r_t, 1) -> (1, r_t): one small relayout per row block, off the hot
        # loop, in exchange for full-lane (unmasked) output stores.
        out_ref[0:1, :] = (sum_acc[...] * inv_hw).T.astype(out_ref.dtype)
        out_ref[1:2, :] = max_acc[...].T.astype(out_ref.dtype)


def _choose_row_tile(R, row_tile):
    if R <= 128:
        # Single row block; block dim == full dim so any R is legal.
        return R
    row_tile = max(128, _round_up(row_tile, 128))
    # Aim for >= 2 row blocks so both TensorCores are busy on v7x (2 TCs per
    # chip); keep the tile a multiple of 128 so the (2, r_t) output block
    # stays lane-dense.  Costs at most a handful of extra grid steps on
    # single-TC chips (v5e/v6e).
    half = _round_up(pl.cdiv(R, 2), 128)
    return min(row_tile, half)
    # TODO(synk): for tiny R with huge HW, a v7x-only spatial split with a
    # partial (sum, max) combine epilogue would recover the second core.


def _choose_hw_tile(HW, hw_tile):
    hw_tile = max(128, _round_up(hw_tile, 128))
    # Collapse the spatial grid axis to 1 whenever HW fits a single tile so
    # each row DMA is one contiguous segment.
    return min(hw_tile, _round_up(HW, 128))


def _pooled_stats(x2d, *, row_tile, hw_tile):
    """x2d: (R, HW) float -> (2, R) float32 with row 0 = mean, row 1 = max."""
    R, HW = x2d.shape

    r_t = _choose_row_tile(R, row_tile)
    hw_t = _choose_hw_tile(HW, hw_tile)

    grid_r = pl.cdiv(R, r_t)
    grid_k = pl.cdiv(HW, hw_t)
    R_out = grid_r * r_t                 # only the tiny OUTPUT is padded
    mask_hw = (HW % hw_t) != 0           # ragged last spatial block?

    kernel = functools.partial(_pool_kernel, hw_total=HW, hw_tile=hw_t,
                               mask_hw=mask_hw)

    # VMEM budget: double-buffered input block + (tiny) output block + scratch.
    in_block = r_t * hw_t * x2d.dtype.itemsize
    out_block = 8 * r_t * 4              # (2, r_t) padded to 8 sublanes
    scratch = 2 * r_t * 128 * 4          # (r_t, 1) lane-padded accumulators
    vmem_bytes = 2 * in_block + 2 * out_block + scratch + (2 << 20)
    compiler_kwargs = dict(dimension_semantics=("parallel", "arbitrary"))
    if vmem_bytes > (16 << 20):          # beyond the smallest (v5e) default
        compiler_kwargs["vmem_limit_bytes"] = int(min(vmem_bytes, 64 << 20))

    pooled = pl.pallas_call(
        kernel,
        out_shape=jax.ShapeDtypeStruct((2, R_out), jnp.float32),
        grid_spec=pltpu.PrefetchScalarGridSpec(
            num_scalar_prefetch=0,
            grid=(grid_r, grid_k),
            in_specs=[pl.BlockSpec((r_t, hw_t), lambda i, k: (i, k))],
            out_specs=pl.BlockSpec((2, r_t), lambda i, k: (0, i)),
            scratch_shapes=[
                pltpu.VMEM((r_t, 1), jnp.float32),   # running sum
                pltpu.VMEM((r_t, 1), jnp.float32),   # running max
            ],
        ),
        compiler_params=pltpu.CompilerParams(**compiler_kwargs),
    )(x2d)

    return pooled[:, :R]


@functools.partial(jax.jit, static_argnames=("row_tile", "hw_tile"))
def channel_attention(x, w1, w2, *, row_tile=512, hw_tile=2048):
    """x: (N, C, H, W) float32; w1: (Cr, C) fc1 weight (squeezed 1x1 conv);
    w2: (C, Cr) fc2 weight. Returns (N, C, 1, 1) like the PyTorch module."""
    N, C, H, W = x.shape
    HW = H * W

    # Dense row-major pooling layout: (N*C, HW). Contiguous, no data movement.
    x2d = x.reshape(N * C, HW)
    pooled = _pooled_stats(x2d, row_tile=row_tile, hw_tile=hw_tile)  # (2, N*C)

    avg = pooled[0].reshape(N, C)
    mx = pooled[1].reshape(N, C)

    # Tiny shared MLP (1x1 convs) + sigmoid in plain XLA, batched over
    # {avg, max} so fc1/fc2 each run once on a (2N, C) matrix.
    p = jnp.concatenate([avg, mx], axis=0)             # (2N, C)
    h = jnp.maximum(p @ w1.T, 0.0)                     # (2N, Cr)
    o = h @ w2.T                                       # (2N, C)
    out = jax.nn.sigmoid(o[:N] + o[N:])                # (N, C)
    return out.reshape(N, C, 1, 1)


def channel_attention_ref(x, w1, w2):
    """Pure-JAX reference mirroring the PyTorch forward."""
    avg = jnp.mean(x, axis=(2, 3))               # (N, C)
    mx = jnp.max(x, axis=(2, 3))                 # (N, C)

    def mlp(p):
        h = jnp.maximum(p @ w1.T, 0.0)           # (N, Cr)
        return h @ w2.T                          # (N, C)

    out = jax.nn.sigmoid(mlp(avg) + mlp(mx))
    return out[:, :, None, None]


if __name__ == "__main__":
    # Module config: in_planes=64, reduction=16 -> hidden=4
    N, C, H, W = 2, 64, 16, 16
    reduction = 16
    Cr = C // reduction

    key = jax.random.PRNGKey(0)
    kx, k1, k2, k3 = jax.random.split(key, 4)

    x = jax.random.normal(kx, (N, C, H, W), dtype=jnp.float32)
    # Conv2d(C, Cr, 1, bias=False) weight (Cr, C, 1, 1) -> squeezed to (Cr, C)
    w1 = jax.random.normal(k1, (Cr, C), dtype=jnp.float32) * (1.0 / jnp.sqrt(C))
    # Conv2d(Cr, C, 1, bias=False) weight -> (C, Cr)
    w2 = jax.random.normal(k2, (C, Cr), dtype=jnp.float32) * (1.0 / jnp.sqrt(Cr))

    out = jax.block_until_ready(channel_attention(x, w1, w2))
    ref = channel_attention_ref(x, w1, w2)
    assert out.shape == (N, C, 1, 1)
    assert jnp.allclose(out, ref, atol=1e-5, rtol=1e-5), "mismatch vs reference"

    # Extra correctness check exercising the unpadded ragged paths:
    # R=288 -> 2 row blocks (second ragged), HW=600 with hw_tile=256 ->
    # 3 spatial blocks with a masked last block.
    xr = jax.random.normal(k3, (288, 600), dtype=jnp.float32)
    pooled = jax.block_until_ready(
        jax.jit(functools.partial(_pooled_stats, row_tile=512, hw_tile=256))(xr))
    assert pooled.shape == (2, 288)
    assert jnp.allclose(pooled[0], jnp.mean(xr, axis=1), atol=1e-5, rtol=1e-5)
    assert jnp.allclose(pooled[1], jnp.max(xr, axis=1), atol=1e-5, rtol=1e-5)

    print("KERNEL_OK")
</pallas_src>

<mosaic_0001>
module attributes {stable_mosaic.version = 11 : i64} {
  func.func @_pool_kernel(%arg0: i32, %arg1: i32, %arg2: memref<128x256xf32, #tpu.memory_space<vmem>>, %arg3: memref<2x128xf32, #tpu.memory_space<vmem>>, %arg4: memref<128x1xf32, #tpu.memory_space<vmem>>, %arg5: memref<128x1xf32, #tpu.memory_space<vmem>>) attributes {dimension_semantics = [#tpu.dimension_semantics<parallel>, #tpu.dimension_semantics<arbitrary>], iteration_bounds = array<i64: 1, 1>, scalar_prefetch = 0 : i64, scratch_operands = 2 : i64, tpu.core_type = #tpu.core_type<tc>, window_params = [{transform_indices = @transform_0, window_bounds = array<i64: 128, 256>}, {transform_indices = @transform_1, window_bounds = array<i64: 2, 128>}]} {
    %c0_i32 = arith.constant 0 : i32
    %0 = arith.cmpi eq, %arg1, %c0_i32 : i32
    %1 = arith.extui %0 : i1 to i32
    %c0_i32_0 = arith.constant 0 : i32
    %2 = arith.cmpi ne, %1, %c0_i32_0 : i32
    scf.if %2 {
      %cst_13 = arith.constant 0.000000e+00 : f32
      %17 = vector.broadcast %cst_13 : f32 to vector<128x1xf32>
      %c0_14 = arith.constant 0 : index
      %c0_15 = arith.constant 0 : index
      %18 = vector.load %arg4[%c0_14, %c0_15] : memref<128x1xf32, #tpu.memory_space<vmem>>, vector<128x1xf32>
      tpu.vector_store %arg4[%c0_14, %c0_15], %17 {strides = array<i32>} : memref<128x1xf32, #tpu.memory_space<vmem>>, vector<128x1xf32>,
      %cst_16 = arith.constant 0xFF800000 : f32
      %19 = vector.broadcast %cst_16 : f32 to vector<128x1xf32>
      %c0_17 = arith.constant 0 : index
      %c0_18 = arith.constant 0 : index
      %20 = vector.load %arg5[%c0_17, %c0_18] : memref<128x1xf32, #tpu.memory_space<vmem>>, vector<128x1xf32>
      tpu.vector_store %arg5[%c0_17, %c0_18], %19 {strides = array<i32>} : memref<128x1xf32, #tpu.memory_space<vmem>>, vector<128x1xf32>,
    } else {
    }
    %c0 = arith.constant 0 : index
    %c0_1 = arith.constant 0 : index
    %3 = vector.load %arg2[%c0, %c0_1] : memref<128x256xf32, #tpu.memory_space<vmem>>, vector<128x256xf32>
    %c0_2 = arith.constant 0 : index
    %c0_3 = arith.constant 0 : index
    %4 = vector.load %arg4[%c0_2, %c0_3] : memref<128x1xf32, #tpu.memory_space<vmem>>, vector<128x1xf32>
    %cst = arith.constant dense<0.000000e+00> : vector<128xf32>
    %5 = vector.multi_reduction <add>, %3, %cst [1] : vector<128x256xf32> to vector<128xf32>
    %6 = vector.shape_cast %5 : vector<128xf32> to vector<128x1xf32>
    %7 = arith.addf %4, %6 : vector<128x1xf32>
    %c0_4 = arith.constant 0 : index
    %c0_5 = arith.constant 0 : index
    %8 = vector.load %arg4[%c0_4, %c0_5] : memref<128x1xf32, #tpu.memory_space<vmem>>, vector<128x1xf32>
    tpu.vector_store %arg4[%c0_4, %c0_5], %7 {strides = array<i32>} : memref<128x1xf32, #tpu.memory_space<vmem>>, vector<128x1xf32>,
    %c0_6 = arith.constant 0 : index
    %c0_7 = arith.constant 0 : index
    %9 = vector.load %arg5[%c0_6, %c0_7] : memref<128x1xf32, #tpu.memory_space<vmem>>, vector<128x1xf32>
    %cst_8 = arith.constant dense<0xFF800000> : vector<128xf32>
    %10 = vector.multi_reduction <maximumf>, %3, %cst_8 [1] : vector<128x256xf32> to vector<128xf32>
    %11 = vector.shape_cast %10 : vector<128xf32> to vector<128x1xf32>
    %12 = arith.maximumf %9, %11 : vector<128x1xf32>
    %c0_9 = arith.constant 0 : index
    %c0_10 = arith.constant 0 : index
    %13 = vector.load %arg5[%c0_9, %c0_10] : memref<128x1xf32, #tpu.memory_space<vmem>>, vector<128x1xf32>
    tpu.vector_store %arg5[%c0_9, %c0_10], %12 {strides = array<i32>} : memref<128x1xf32, #tpu.memory_space<vmem>>, vector<128x1xf32>,
    %c0_i32_11 = arith.constant 0 : i32
    %14 = arith.cmpi eq, %arg1, %c0_i32_11 : i32
    %15 = arith.extui %14 : i1 to i32
    %c0_i32_12 = arith.constant 0 : i32
    %16 = arith.cmpi ne, %15, %c0_i32_12 : i32
    scf.if %16 {
      %c0_13 = arith.constant 0 : index
      %c0_14 = arith.constant 0 : index
      %17 = vector.load %arg4[%c0_13, %c0_14] : memref<128x1xf32, #tpu.memory_space<vmem>>, vector<128x1xf32>
      %cst_15 = arith.constant 3.906250e-03 : f32
      %18 = vector.broadcast %cst_15 : f32 to vector<128x1xf32>
      %19 = arith.mulf %17, %18 : vector<128x1xf32>
      %20 = tpu.transpose %19, [1, 0] : vector<128x1xf32> -> vector<1x128xf32>
      %c0_16 = arith.constant 0 : index
      %c0_17 = arith.constant 0 : index
      %21 = vector.load %arg3[%c0_16, %c0_17] : memref<2x128xf32, #tpu.memory_space<vmem>>, vector<1x128xf32>
      tpu.vector_store %arg3[%c0_16, %c0_17], %20 {strides = array<i32>} : memref<2x128xf32, #tpu.memory_space<vmem>>, vector<1x128xf32>,
      %c0_18 = arith.constant 0 : index
      %c0_19 = arith.constant 0 : index
      %22 = vector.load %arg5[%c0_18, %c0_19] : memref<128x1xf32, #tpu.memory_space<vmem>>, vector<128x1xf32>
      %23 = tpu.transpose %22, [1, 0] : vector<128x1xf32> -> vector<1x128xf32>
      %c1 = arith.constant 1 : index
      %c0_20 = arith.constant 0 : index
      %24 = vector.load %arg3[%c1, %c0_20] : memref<2x128xf32, #tpu.memory_space<vmem>>, vector<1x128xf32>
      tpu.vector_store %arg3[%c1, %c0_20], %23 {strides = array<i32>} : memref<2x128xf32, #tpu.memory_space<vmem>>, vector<1x128xf32>,
    } else {
    }
    return
  }
  func.func @transform_0(%arg0: i32, %arg1: i32) -> (i32, i32) {
    %c0_i32 = arith.constant 0 : i32
    return %arg0, %arg1 : i32, i32
  }
  func.func @transform_1(%arg0: i32, %arg1: i32) -> (i32, i32) {
    %c0_i32 = arith.constant 0 : i32
    %c0_i32_0 = arith.constant 0 : i32
    return %c0_i32, %arg0 : i32, i32
  }
}

</mosaic_0001>

<bundles_post_ra>
// kernel: squeeze.2
= control target key start
LH: loop header
LB: loop body
LE: loop exit
PB: predicated region body
PF: predicated region fallthrough
CT: control target
= control target key end

     0   :  { %vm19_vm0 = vcmask 523264   ;;  %v38_v6 = vmov 0.0   ;;  %s55_s0 = inlined_call_operand.vmem [shape: bf16[128], index: 0, kind: input, shape index: {}]   ;;  %s56_s1 = inlined_call_operand.vmem [shape: bf16[2,64], index: 1, kind: output, shape index: {}]  }
   0x1   :  { %v14_v0 = vld [vmem:[%s55_s0] sm:$0x1]  ;;  %s37_s0 = smov 64  }
   0x2   :  { %v15_v1 = vunpack.c.l.bf16 %v14_v0 }
   0x4   :  { %17 = vst [vmem:[#allocation1] sm:$0x3] %v15_v1 }
   0xb   :  { %v21_v2 = vld [vmem:[#allocation1] sm:$0x1]  }
   0xc   :  { %v18_v3 = vld [vmem:[#allocation1] sm:$0x1]   ;;  %22 = vrot.lane.b32.xlu0 %v21_v2, %s37_s0 }
   0xd   :  { %20 = vst.msk [vmem:[#allocation0] sm:$0x1] %vm19_vm0, %v18_v3  }
  0x7e   :  { %v23_v4 = vpop.permute.xlu0 %22  }
  0x7f   :  { %26 = vst.msk [vmem:[#allocation0 + $0x1] sm:$0x1] %vm19_vm0, %v23_v4  }
  0x86   :  { %v31_v5 = vld [vmem:[#allocation0] sm:$0x3] }
  0x87   :  { %v32_v7 = vpack.c.bf16 %v38_v6, %v31_v5 }
  0x89   :  { %34 = vst [vmem:[%s56_s1] sm:$0x1] %v32_v7 }

// kernel: channel_attention.1
= control target key start
LH: loop header
LB: loop body
LE: loop exit
PB: predicated region body
PF: predicated region fallthrough
CT: control target
= control target key end

     0   :  { %vm12_vm0 = vcmask 7168   ;;  %v393_v3 = vmov 0.0   ;;  %v394_v21 = vmov -inf   ;;  %s571_s0 = inlined_call_operand.vmem [shape: f32[128,256], index: 0, kind: input, shape index: {}]   ;;  %s572_s1 = inlined_call_operand.vmem [shape: f32[2,128], index: 1, kind: output, shape index: {}]  }
   0x1   :  { %v45_v0 = vld [vmem:[%s571_s0] sm:$0xff]  ;;  %v46_v1 = vld [vmem:[%s571_s0 + $0x8] sm:$0xff]  ;;  %v47_v2 = vld [vmem:[%s571_s0 + $0x10] sm:$0xff]  ;;  %13 = vst.msk [vmem:[#allocation2] sm:$0xff] %vm12_vm0, %v393_v3 }
   0x2   :  { %14 = vst.msk [vmem:[#allocation2 + $0x8] sm:$0xff] %vm12_vm0, %v393_v3  ;;  %15 = vst.msk [vmem:[#allocation2 + $0x10] sm:$0xff] %vm12_vm0, %v393_v3  ;;  %v93_v4 = vadd.f32 %v46_v1, %v45_v0  ;;  %v190_v5 = vmax.f32 %v45_v0, %v46_v1  ;;  %v48_v6 = vld [vmem:[%s571_s0 + $0x18] sm:$0xff]  ;;  %v49_v7 = vld [vmem:[%s571_s0 + $0x20] sm:$0xff] }
   0x3   :  { %16 = vst.msk [vmem:[#allocation2 + $0x18] sm:$0xff] %vm12_vm0, %v393_v3  ;;  %17 = vst.msk [vmem:[#allocation2 + $0x20] sm:$0xff] %vm12_vm0, %v393_v3  ;;  %v50_v8 = vld [vmem:[%s571_s0 + $0x28] sm:$0xff]  ;;  %v96_v9 = vadd.f32 %v48_v6, %v47_v2  ;;  %v51_v11 = vld [vmem:[%s571_s0 + $0x30] sm:$0xff]  ;;  %v193_v13 = vmax.f32 %v47_v2, %v48_v6 }
   0x4   :  { %18 = vst.msk [vmem:[#allocation2 + $0x28] sm:$0xff] %vm12_vm0, %v393_v3  ;;  %19 = vst.msk [vmem:[#allocation2 + $0x30] sm:$0xff] %vm12_vm0, %v393_v3  ;;  %94 = vadd.xlane.f32.xlu0 %v93_v4  ;;  %191 = vmax.xlane.f32.xlu1 %v190_v5  ;;  %v99_v10 = vadd.f32 %v50_v8, %v49_v7  ;;  %v52_v12 = vld [vmem:[%s571_s0 + $0x38] sm:$0xff]  ;;  %v53_v15 = vld [vmem:[%s571_s0 + $0x40] sm:$0xff]  ;;  %v196_v17 = vmax.f32 %v49_v7, %v50_v8 }
   0x5   :  { %20 = vst.msk [vmem:[#allocation2 + $0x38] sm:$0xff] %vm12_vm0, %v393_v3  ;;  %21 = vst.msk [vmem:[#allocation2 + $0x40] sm:$0xff] %vm12_vm0, %v393_v3  ;;  %v102_v14 = vadd.f32 %v52_v12, %v51_v11  ;;  %v54_v16 = vld [vmem:[%s571_s0 + $0x48] sm:$0xff]  ;;  %v55_v19 = vld [vmem:[%s571_s0 + $0x50] sm:$0xff]  ;;  %v199_v22 = vmax.f32 %v51_v11, %v52_v12 }
   0x6   :  { %22 = vst.msk [vmem:[#allocation2 + $0x48] sm:$0xff] %vm12_vm0, %v393_v3  ;;  %23 = vst.msk [vmem:[#allocation2 + $0x50] sm:$0xff] %vm12_vm0, %v393_v3  ;;  %v105_v18 = vadd.f32 %v54_v16, %v53_v15  ;;  %v56_v20 = vld [vmem:[%s571_s0 + $0x58] sm:$0xff]  ;;  %v57_v24 = vld [vmem:[%s571_s0 + $0x60] sm:$0xff]  ;;  %v202_v26 = vmax.f32 %v53_v15, %v54_v16 }
   0x7   :  { %24 = vst.msk [vmem:[#allocation2 + $0x58] sm:$0xff] %vm12_vm0, %v393_v3  ;;  %25 = vst.msk [vmem:[#allocation2 + $0x60] sm:$0xff] %vm12_vm0, %v393_v3  ;;  %v108_v23 = vadd.f32 %v56_v20, %v55_v19  ;;  %v58_v25 = vld [vmem:[%s571_s0 + $0x68] sm:$0xff]  ;;  %v59_v28 = vld [vmem:[%s571_s0 + $0x70] sm:$0xff]  ;;  %v205_v30 = vmax.f32 %v55_v19, %v56_v20 }
   0x8   :  { %26 = vst.msk [vmem:[#allocation2 + $0x68] sm:$0xff] %vm12_vm0, %v393_v3  ;;  %27 = vst.msk [vmem:[#allocation2 + $0x70] sm:$0xff] %vm12_vm0, %v393_v3  ;;  %97 = vadd.xlane.f32.xlu0 %v96_v9  ;;  %100 = vadd.xlane.f32.xlu1 %v99_v10  ;;  %v111_v27 = vadd.f32 %v58_v25, %v57_v24  ;;  %v60_v29 = vld [vmem:[%s571_s0 + $0x78] sm:$0xff]  ;;  %v61_v32 = vld [vmem:[%s571_s0 + $0x80] sm:$0xff]  ;;  %v208_v34 = vmax.f32 %v57_v24, %v58_v25 }
   0x9   :  { %28 = vst.msk [vmem:[#allocation2 + $0x78] sm:$0xff] %vm12_vm0, %v393_v3  ;;  %29 = vst.msk [vmem:[#allocation3] sm:$0xff] %vm12_vm0, %v394_v21  ;;  %v114_v31 = vadd.f32 %v60_v29, %v59_v28  ;;  %v62_v33 = vld [vmem:[%s571_s0 + $0x88] sm:$0xff]  ;;  %v63_v36 = vld [vmem:[%s571_s0 + $0x90] sm:$0xff]  ;;  %v211_v38 = vmax.f32 %v59_v28, %v60_v29 }
   0xa   :  { %30 = vst.msk [vmem:[#allocation3 + $0x8] sm:$0xff] %vm12_vm0, %v394_v21  ;;  %31 = vst.msk [vmem:[#allocation3 + $0x10] sm:$0xff] %vm12_vm0, %v394_v21  ;;  %v117_v35 = vadd.f32 %v62_v33, %v61_v32  ;;  %v64_v37 = vld [vmem:[%s571_s0 + $0x98] sm:$0xff]  ;;  %v65_v40 = vld [vmem:[%s571_s0 + $0xa0] sm:$0xff]  ;;  %v214_v42 = vmax.f32 %v61_v32, %v62_v33 }
   0xb   :  { %32 = vst.msk [vmem:[#allocation3 + $0x18] sm:$0xff] %vm12_vm0, %v394_v21  ;;  %33 = vst.msk [vmem:[#allocation3 + $0x20] sm:$0xff] %vm12_vm0, %v394_v21  ;;  %v120_v39 = vadd.f32 %v64_v37, %v63_v36  ;;  %v66_v41 = vld [vmem:[%s571_s0 + $0xa8] sm:$0xff]  ;;  %v67_v44 = vld [vmem:[%s571_s0 + $0xb0] sm:$0xff]  ;;  %v217_v46 = vmax.f32 %v63_v36, %v64_v37 }
   0xc   :  { %194 = vmax.xlane.f32.xlu0 %v193_v13  ;;  %103 = vadd.xlane.f32.xlu1 %v102_v14  ;;  %34 = vst.msk [vmem:[#allocation3 + $0x28] sm:$0xff] %vm12_vm0, %v394_v21  ;;  %35 = vst.msk [vmem:[#allocation3 + $0x30] sm:$0xff] %vm12_vm0, %v394_v21  ;;  %v123_v43 = vadd.f32 %v66_v41, %v65_v40  ;;  %v68_v45 = vld [vmem:[%s571_s0 + $0xb8] sm:$0xff]  ;;  %v69_v48 = vld [vmem:[%s571_s0 + $0xc0] sm:$0xff]  ;;  %v220_v50 = vmax.f32 %v65_v40, %v66_v41 }
   0xd   :  { %36 = vst.msk [vmem:[#allocation3 + $0x38] sm:$0xff] %vm12_vm0, %v394_v21  ;;  %37 = vst.msk [vmem:[#allocation3 + $0x40] sm:$0xff] %vm12_vm0, %v394_v21  ;;  %v126_v47 = vadd.f32 %v68_v45, %v67_v44  ;;  %v70_v49 = vld [vmem:[%s571_s0 + $0xc8] sm:$0xff]  ;;  %v71_v52 = vld [vmem:[%s571_s0 + $0xd0] sm:$0xff]  ;;  %v223_v54 = vmax.f32 %v67_v44, %v68_v45 }
   0xe   :  { %38 = vst.msk [vmem:[#allocation3 + $0x48] sm:$0xff] %vm12_vm0, %v394_v21  ;;  %39 = vst.msk [vmem:[#allocation3 + $0x50] sm:$0xff] %vm12_vm0, %v394_v21  ;;  %v129_v51 = vadd.f32 %v70_v49, %v69_v48  ;;  %v72_v53 = vld [vmem:[%s571_s0 + $0xd8] sm:$0xff]  ;;  %v73_v56 = vld [vmem:[%s571_s0 + $0xe0] sm:$0xff]  ;;  %v226_v58 = vmax.f32 %v69_v48, %v70_v49 }
   0xf   :  { %40 = vst.msk [vmem:[#allocation3 + $0x58] sm:$0xff] %vm12_vm0, %v394_v21  ;;  %41 = vst.msk [vmem:[#allocation3 + $0x60] sm:$0xff] %vm12_vm0, %v394_v21  ;;  %v132_v55 = vadd.f32 %v72_v53, %v71_v52  ;;  %v74_v57 = vld [vmem:[%s571_s0 + $0xe8] sm:$0xff]  ;;  %v75_v60 = vld [vmem:[%s571_s0 + $0xf0] sm:$0xff]  ;;  %v229_v62 = vmax.f32 %v71_v52, %v72_v53 }
  0x10   :  { %42 = vst.msk [vmem:[#allocation3 + $0x68] sm:$0xff] %vm12_vm0, %v394_v21  ;;  %43 = vst.msk [vmem:[#allocation3 + $0x70] sm:$0xff] %vm12_vm0, %v394_v21  ;;  %197 = vmax.xlane.f32.xlu0 %v196_v17  ;;  %106 = vadd.xlane.f32.xlu1 %v105_v18  ;;  %v135_v59 = vadd.f32 %v74_v57, %v73_v56  ;;  %v76_v61 = vld [vmem:[%s571_s0 + $0xf8] sm:$0xff]  ;;  %v232_v0 = vmax.f32 %v73_v56, %v74_v57  ;;  %v77_v2 = vld [vmem:[#allocation2] sm:$0xff] }
  0x11   :  { %44 = vst.msk [vmem:[#allocation3 + $0x78] sm:$0xff] %vm12_vm0, %v394_v21  ;;  %v138_v63 = vadd.f32 %v76_v61, %v75_v60  ;;  %v235_v1 = vmax.f32 %v75_v60, %v76_v61  ;;  %v174_v3 = vld [vmem:[#allocation3] sm:$0xff]  ;;  %v78_v8 = vld [vmem:[#allocation2 + $0x8] sm:$0xff]  ;;  %v79_v9 = vld [vmem:[#allocation2 + $0x10] sm:$0xff] }
  0x12   :  { %v175_v14 = vld [vmem:[#allocation3 + $0x8] sm:$0xff]  ;;  %v80_v15 = vld [vmem:[#allocation2 + $0x18] sm:$0xff]  ;;  %v176_v20 = vld [vmem:[#allocation3 + $0x10] sm:$0xff] }
  0x13   :  { %v177_v29 = vld [vmem:[#allocation3 + $0x18] sm:$0xff]  ;;  %v83_v41 = vld [vmem:[#allocation2 + $0x30] sm:$0xff] }
  0x14   :  { %200 = vmax.xlane.f32.xlu0 %v199_v22  ;;  %109 = vadd.xlane.f32.xlu1 %v108_v23  ;;  %v81_v23 = vld [vmem:[#allocation2 + $0x20] sm:$0xff]  ;;  %v180_v56 = vld [vmem:[#allocation3 + $0x30] sm:$0xff] }
  0x18   :  { %203 = vmax.xlane.f32.xlu0 %v202_v26  ;;  %112 = vadd.xlane.f32.xlu1 %v111_v27 }
  0x1c   :  { %206 = vmax.xlane.f32.xlu0 %v205_v30  ;;  %115 = vadd.xlane.f32.xlu1 %v114_v31  ;;  %v82_v31 = vld [vmem:[#allocation2 + $0x28] sm:$0xff] }
  0x20   :  { %209 = vmax.xlane.f32.xlu0 %v208_v34  ;;  %118 = vadd.xlane.f32.xlu1 %v117_v35 }
  0x24   :  { %212 = vmax.xlane.f32.xlu0 %v211_v38  ;;  %121 = vadd.xlane.f32.xlu1 %v120_v39  ;;  %v178_v38 = vld [vmem:[#allocation3 + $0x20] sm:$0xff] }
  0x28   :  { %215 = vmax.xlane.f32.xlu0 %v214_v42  ;;  %124 = vadd.xlane.f32.xlu1 %v123_v43 }
  0x2c   :  { %218 = vmax.xlane.f32.xlu0 %v217_v46  ;;  %127 = vadd.xlane.f32.xlu1 %v126_v47  ;;  %v179_v47 = vld [vmem:[#allocation3 + $0x28] sm:$0xff] }
  0x30   :  { %221 = vmax.xlane.f32.xlu0 %v220_v50  ;;  %130 = vadd.xlane.f32.xlu1 %v129_v51  ;;  %v84_v50 = vld [vmem:[#allocation2 + $0x38] sm:$0xff] }
  0x34   :  { %224 = vmax.xlane.f32.xlu0 %v223_v54  ;;  %133 = vadd.xlane.f32.xlu1 %v132_v55 }
  0x38   :  { %227 = vmax.xlane.f32.xlu0 %v226_v58  ;;  %136 = vadd.xlane.f32.xlu1 %v135_v59  ;;  %v85_v59 = vld [vmem:[#allocation2 + $0x40] sm:$0xff] }
  0x3c   :  { %230 = vmax.xlane.f32.xlu0 %v229_v62  ;;  %139 = vadd.xlane.f32.xlu1 %v138_v63 }
  0x40   :  { %233 = vmax.xlane.f32.xlu0 %v232_v0  ;;  %236 = vmax.xlane.f32.xlu1 %v235_v1  ;;  %v181_v1 = vld [vmem:[#allocation3 + $0x38] sm:$0xff] }
  0x91   :  { %v95_v4 = vpop.xlane.xlu0 %94  ;;  %v192_v5 = vpop.xlane.xlu1 %191 }
  0x92   :  { %v141_v6 = vadd.f32 %v95_v4, %v77_v2  ;;  %v238_v7 = vmax.f32 %v174_v3, %v192_v5  ;;  %v86_v4 = vld [vmem:[#allocation2 + $0x48] sm:$0xff] }
  0x94   :  { %158 = vst.msk [vmem:[#allocation2] sm:$0xff] %vm12_vm0, %v141_v6  ;;  %254 = vst.msk [vmem:[#allocation3] sm:$0xff] %vm12_vm0, %v238_v7 }
  0x95   :  { %v98_v10 = vpop.xlane.xlu0 %97  ;;  %v101_v11 = vpop.xlane.xlu1 %100 }
  0x96   :  { %v142_v12 = vadd.f32 %v98_v10, %v78_v8  ;;  %v143_v13 = vadd.f32 %v101_v11, %v79_v9  ;;  %v182_v10 = vld [vmem:[#allocation3 + $0x40] sm:$0xff] }
  0x98   :  { %159 = vst.msk [vmem:[#allocation2 + $0x8] sm:$0xff] %vm12_vm0, %v142_v12  ;;  %160 = vst.msk [vmem:[#allocation2 + $0x10] sm:$0xff] %vm12_vm0, %v143_v13  ;;  %v87_v13 = vld [vmem:[#allocation2 + $0x50] sm:$0xff] }
  0x99   :  { %v195_v16 = vpop.xlane.xlu0 %194  ;;  %v104_v17 = vpop.xlane.xlu1 %103 }
  0x9a   :  { %v239_v18 = vmax.f32 %v175_v14, %v195_v16  ;;  %v144_v19 = vadd.f32 %v104_v17, %v80_v15 }
  0x9b   :  { %v273_v21 = vld [vmem:[#allocation2] sm:$0xff] }
  0x9c   :  { %v338_v22 = vld [vmem:[#allocation3] sm:$0xff]  ;;  %255 = vst.msk [vmem:[#allocation3 + $0x8] sm:$0xff] %vm12_vm0, %v239_v18  ;;  %161 = vst.msk [vmem:[#allocation2 + $0x18] sm:$0xff] %vm12_vm0, %v144_v19  ;;  %v289_v24 = vmul.f32 0.00390625, %v273_v21  ;;  %v183_v19 = vld [vmem:[#allocation3 + $0x48] sm:$0xff] }
  0x9d   :  { %354 = vxpose.xlu1.b32.start [1/16] (narrow) %v338_v22, 8  ;;  %v198_v25 = vpop.xlane.xlu0 %197  ;;  %v107_v26 = vpop.xlane.xlu1 %106  ;;  %v88_v22 = vld [vmem:[#allocation2 + $0x58] sm:$0xff] }
  0x9e   :  { %v240_v27 = vmax.f32 %v176_v20, %v198_v25  ;;  %305 = vxpose.xlu0.b32.start [1/16] (narrow) %v289_v24, 8  ;;  %v145_v28 = vadd.f32 %v107_v26, %v81_v23 }
  0x9f   :  { %v274_v30 = vld [vmem:[#allocation2 + $0x8] sm:$0xff]  ;;  %v275_v32 = vld [vmem:[#allocation2 + $0x10] sm:$0xff] }
  0xa0   :  { %256 = vst.msk [vmem:[#allocation3 + $0x10] sm:$0xff] %vm12_vm0, %v240_v27  ;;  %162 = vst.msk [vmem:[#allocation2 + $0x20] sm:$0xff] %vm12_vm0, %v145_v28  ;;  %v290_v33 = vmul.f32 0.00390625, %v274_v30  ;;  %v291_v39 = vmul.f32 0.00390625, %v275_v32  ;;  %v184_v28 = vld [vmem:[#allocation3 + $0x50] sm:$0xff] }
  0xa1   :  { %v201_v34 = vpop.xlane.xlu0 %200  ;;  %v110_v35 = vpop.xlane.xlu1 %109 }
  0xa2   :  { %v241_v36 = vmax.f32 %v177_v29, %v201_v34  ;;  %306 = vxpose.xlu0.b32.cont [2/16] (narrow) %v290_v33, 8  ;;  %v146_v37 = vadd.f32 %v110_v35, %v82_v31  ;;  %v89_v31 = vld [vmem:[#allocation2 + $0x60] sm:$0xff] }
  0xa3   :  { %v339_v40 = vld [vmem:[#allocation3 + $0x8] sm:$0xff]  ;;  %v276_v42 = vld [vmem:[#allocation2 + $0x18] sm:$0xff] }
  0xa4   :  { %257 = vst.msk [vmem:[#allocation3 + $0x18] sm:$0xff] %vm12_vm0, %v241_v36  ;;  %355 = vxpose.xlu1.b32.cont [2/16] (narrow) %v339_v40, 8  ;;  %163 = vst.msk [vmem:[#allocation2 + $0x28] sm:$0xff] %vm12_vm0, %v146_v37  ;;  %v292_v48 = vmul.f32 0.00390625, %v276_v42  ;;  %v185_v37 = vld [vmem:[#allocation3 + $0x58] sm:$0xff]  ;;  %v90_v40 = vld [vmem:[#allocation2 + $0x68] sm:$0xff] }
  0xa5   :  { %v204_v43 = vpop.xlane.xlu0 %203  ;;  %v113_v44 = vpop.xlane.xlu1 %112 }
  0xa6   :  { %v242_v45 = vmax.f32 %v178_v38, %v204_v43  ;;  %307 = vxpose.xlu0.b32.cont [3/16] (narrow) %v291_v39, 8  ;;  %v147_v46 = vadd.f32 %v113_v44, %v83_v41 }
  0xa7   :  { %v340_v49 = vld [vmem:[#allocation3 + $0x10] sm:$0xff]  ;;  %v277_v51 = vld [vmem:[#allocation2 + $0x20] sm:$0xff] }
  0xa8   :  { %258 = vst.msk [vmem:[#allocation3 + $0x20] sm:$0xff] %vm12_vm0, %v242_v45  ;;  %356 = vxpose.xlu1.b32.cont [3/16] (narrow) %v340_v49, 8  ;;  %164 = vst.msk [vmem:[#allocation2 + $0x30] sm:$0xff] %vm12_vm0, %v147_v46  ;;  %v293_v57 = vmul.f32 0.00390625, %v277_v51  ;;  %v186_v46 = vld [vmem:[#allocation3 + $0x60] sm:$0xff]  ;;  %v91_v49 = vld [vmem:[#allocation2 + $0x70] sm:$0xff] }
  0xa9   :  { %v207_v52 = vpop.xlane.xlu0 %206  ;;  %v116_v53 = vpop.xlane.xlu1 %115 }
  0xaa   :  { %v243_v54 = vmax.f32 %v179_v47, %v207_v52  ;;  %308 = vxpose.xlu0.b32.cont [4/16] (narrow) %v292_v48, 8  ;;  %v148_v55 = vadd.f32 %v116_v53, %v84_v50 }
  0xab   :  { %v341_v58 = vld [vmem:[#allocation3 + $0x18] sm:$0xff]  ;;  %v278_v60 = vld [vmem:[#allocation2 + $0x28] sm:$0xff] }
  0xac   :  { %259 = vst.msk [vmem:[#allocation3 + $0x28] sm:$0xff] %vm12_vm0, %v243_v54  ;;  %357 = vxpose.xlu1.b32.cont [4/16] (narrow) %v341_v58, 8  ;;  %165 = vst.msk [vmem:[#allocation2 + $0x38] sm:$0xff] %vm12_vm0, %v148_v55  ;;  %v294_v2 = vmul.f32 0.00390625, %v278_v60  ;;  %v187_v55 = vld [vmem:[#allocation3 + $0x68] sm:$0xff]  ;;  %v92_v58 = vld [vmem:[#allocation2 + $0x78] sm:$0xff] }
  0xad   :  { %v210_v61 = vpop.xlane.xlu0 %209  ;;  %v119_v62 = vpop.xlane.xlu1 %118 }
  0xae   :  { %v244_v63 = vmax.f32 %v180_v56, %v210_v61  ;;  %309 = vxpose.xlu0.b32.cont [5/16] (narrow) %v293_v57, 8  ;;  %v149_v0 = vadd.f32 %v119_v62, %v85_v59 }
  0xaf   :  { %v342_v3 = vld [vmem:[#allocation3 + $0x20] sm:$0xff]  ;;  %v279_v5 = vld [vmem:[#allocation2 + $0x30] sm:$0xff] }
  0xb0   :  { %260 = vst.msk [vmem:[#allocation3 + $0x30] sm:$0xff] %vm12_vm0, %v244_v63  ;;  %358 = vxpose.xlu1.b32.cont [5/16] (narrow) %v342_v3, 8  ;;  %166 = vst.msk [vmem:[#allocation2 + $0x40] sm:$0xff] %vm12_vm0, %v149_v0  ;;  %v295_v11 = vmul.f32 0.00390625, %v279_v5  ;;  %v188_v0 = vld [vmem:[#allocation3 + $0x70] sm:$0xff]  ;;  %v189_v3 = vld [vmem:[#allocation3 + $0x78] sm:$0xff] }
  0xb1   :  { %v213_v6 = vpop.xlane.xlu0 %212  ;;  %v122_v7 = vpop.xlane.xlu1 %121 }
  0xb2   :  { %v245_v8 = vmax.f32 %v181_v1, %v213_v6  ;;  %310 = vxpose.xlu0.b32.cont [6/16] (narrow) %v294_v2, 8  ;;  %v150_v9 = vadd.f32 %v122_v7, %v86_v4 }
  0xb3   :  { %v343_v12 = vld [vmem:[#allocation3 + $0x28] sm:$0xff]  ;;  %v280_v14 = vld [vmem:[#allocation2 + $0x38] sm:$0xff] }
  0xb4   :  { %261 = vst.msk [vmem:[#allocation3 + $0x38] sm:$0xff] %vm12_vm0, %v245_v8  ;;  %359 = vxpose.xlu1.b32.cont [6/16] (narrow) %v343_v12, 8  ;;  %167 = vst.msk [vmem:[#allocation2 + $0x48] sm:$0xff] %vm12_vm0, %v150_v9  ;;  %v296_v20 = vmul.f32 0.00390625, %v280_v14 }
  0xb5   :  { %v216_v15 = vpop.xlane.xlu0 %215  ;;  %v125_v16 = vpop.xlane.xlu1 %124 }
  0xb6   :  { %v246_v17 = vmax.f32 %v182_v10, %v216_v15  ;;  %311 = vxpose.xlu0.b32.cont [7/16] (narrow) %v295_v11, 8  ;;  %v151_v18 = vadd.f32 %v125_v16, %v87_v13 }
  0xb7   :  { %v344_v21 = vld [vmem:[#allocation3 + $0x30] sm:$0xff]  ;;  %v281_v23 = vld [vmem:[#allocation2 + $0x40] sm:$0xff] }
  0xb8   :  { %262 = vst.msk [vmem:[#allocation3 + $0x40] sm:$0xff] %vm12_vm0, %v246_v17  ;;  %360 = vxpose.xlu1.b32.cont [7/16] (narrow) %v344_v21, 8  ;;  %168 = vst.msk [vmem:[#allocation2 + $0x50] sm:$0xff] %vm12_vm0, %v151_v18  ;;  %v297_v29 = vmul.f32 0.00390625, %v281_v23 }
  0xb9   :  { %v219_v24 = vpop.xlane.xlu0 %218  ;;  %v128_v25 = vpop.xlane.xlu1 %127 }
  0xba   :  { %v247_v26 = vmax.f32 %v183_v19, %v219_v24  ;;  %312 = vxpose.xlu0.b32.cont [8/16] (narrow) %v296_v20, 8  ;;  %v152_v27 = vadd.f32 %v128_v25, %v88_v22 }
  0xbb   :  { %v345_v30 = vld [vmem:[#allocation3 + $0x38] sm:$0xff]  ;;  %v282_v32 = vld [vmem:[#allocation2 + $0x48] sm:$0xff] }
  0xbc   :  { %263 = vst.msk [vmem:[#allocation3 + $0x48] sm:$0xff] %vm12_vm0, %v247_v26  ;;  %361 = vxpose.xlu1.b32.cont [8/16] (narrow) %v345_v30, 8  ;;  %169 = vst.msk [vmem:[#allocation2 + $0x58] sm:$0xff] %vm12_vm0, %v152_v27  ;;  %v298_v38 = vmul.f32 0.00390625, %v282_v32 }
  0xbd   :  { %v222_v33 = vpop.xlane.xlu0 %221  ;;  %v131_v34 = vpop.xlane.xlu1 %130 }
  0xbe   :  { %v248_v35 = vmax.f32 %v184_v28, %v222_v33  ;;  %313 = vxpose.xlu0.b32.cont [9/16] (narrow) %v297_v29, 8  ;;  %v153_v36 = vadd.f32 %v131_v34, %v89_v31 }
  0xbf   :  { %v346_v39 = vld [vmem:[#allocation3 + $0x40] sm:$0xff]  ;;  %v283_v41 = vld [vmem:[#allocation2 + $0x50] sm:$0xff] }
  0xc0   :  { %264 = vst.msk [vmem:[#allocation3 + $0x50] sm:$0xff] %vm12_vm0, %v248_v35  ;;  %362 = vxpose.xlu1.b32.cont [9/16] (narrow) %v346_v39, 8  ;;  %170 = vst.msk [vmem:[#allocation2 + $0x60] sm:$0xff] %vm12_vm0, %v153_v36  ;;  %v299_v47 = vmul.f32 0.00390625, %v283_v41 }
  0xc1   :  { %v225_v42 = vpop.xlane.xlu0 %224  ;;  %v134_v43 = vpop.xlane.xlu1 %133 }
  0xc2   :  { %v249_v44 = vmax.f32 %v185_v37, %v225_v42  ;;  %314 = vxpose.xlu0.b32.cont [10/16] (narrow) %v298_v38, 8  ;;  %v154_v45 = vadd.f32 %v134_v43, %v90_v40 }
  0xc3   :  { %v347_v48 = vld [vmem:[#allocation3 + $0x48] sm:$0xff]  ;;  %v284_v50 = vld [vmem:[#allocation2 + $0x58] sm:$0xff] }
  0xc4   :  { %265 = vst.msk [vmem:[#allocation3 + $0x58] sm:$0xff] %vm12_vm0, %v249_v44  ;;  %363 = vxpose.xlu1.b32.cont [10/16] (narrow) %v347_v48, 8  ;;  %171 = vst.msk [vmem:[#allocation2 + $0x68] sm:$0xff] %vm12_vm0, %v154_v45  ;;  %v300_v56 = vmul.f32 0.00390625, %v284_v50 }
  0xc5   :  { %v228_v51 = vpop.xlane.xlu0 %227  ;;  %v137_v52 = vpop.xlane.xlu1 %136 }
  0xc6   :  { %v250_v53 = vmax.f32 %v186_v46, %v228_v51  ;;  %315 = vxpose.xlu0.b32.cont [11/16] (narrow) %v299_v47, 8  ;;  %v155_v54 = vadd.f32 %v137_v52, %v91_v49 }
  0xc7   :  { %v348_v57 = vld [vmem:[#allocation3 + $0x50] sm:$0xff]  ;;  %v285_v59 = vld [vmem:[#allocation2 + $0x60] sm:$0xff] }
  0xc8   :  { %266 = vst.msk [vmem:[#allocation3 + $0x60] sm:$0xff] %vm12_vm0, %v250_v53  ;;  %364 = vxpose.xlu1.b32.cont [11/16] (narrow) %v348_v57, 8  ;;  %172 = vst.msk [vmem:[#allocation2 + $0x70] sm:$0xff] %vm12_vm0, %v155_v54  ;;  %v301_v1 = vmul.f32 0.00390625, %v285_v59 }
  0xc9   :  { %v231_v60 = vpop.xlane.xlu0 %230  ;;  %v140_v61 = vpop.xlane.xlu1 %139 }
  0xca   :  { %v251_v62 = vmax.f32 %v187_v55, %v231_v60  ;;  %316 = vxpose.xlu0.b32.cont [12/16] (narrow) %v300_v56, 8  ;;  %v156_v63 = vadd.f32 %v140_v61, %v92_v58 }
  0xcb   :  { %v349_v2 = vld [vmem:[#allocation3 + $0x58] sm:$0xff]  ;;  %v286_v4 = vld [vmem:[#allocation2 + $0x68] sm:$0xff] }
  0xcc   :  { %267 = vst.msk [vmem:[#allocation3 + $0x68] sm:$0xff] %vm12_vm0, %v251_v62  ;;  %365 = vxpose.xlu1.b32.cont [12/16] (narrow) %v349_v2, 8  ;;  %173 = vst.msk [vmem:[#allocation2 + $0x78] sm:$0xff] %vm12_vm0, %v156_v63  ;;  %v302_v9 = vmul.f32 0.00390625, %v286_v4 }
  0xcd   :  { %v234_v5 = vpop.xlane.xlu0 %233  ;;  %v237_v6 = vpop.xlane.xlu1 %236 }
  0xce   :  { %v252_v7 = vmax.f32 %v188_v0, %v234_v5  ;;  %317 = vxpose.xlu0.b32.cont [13/16] (narrow) %v301_v1, 8  ;;  %v253_v8 = vmax.f32 %v189_v3, %v237_v6 }
  0xcf   :  { %v350_v10 = vld [vmem:[#allocation3 + $0x60] sm:$0xff]  ;;  %v287_v11 = vld [vmem:[#allocation2 + $0x70] sm:$0xff] }
  0xd0   :  { %268 = vst.msk [vmem:[#allocation3 + $0x70] sm:$0xff] %vm12_vm0, %v252_v7  ;;  %366 = vxpose.xlu1.b32.cont [13/16] (narrow) %v350_v10, 8  ;;  %269 = vst.msk [vmem:[#allocation3 + $0x78] sm:$0xff] %vm12_vm0, %v253_v8  ;;  %v303_v12 = vmul.f32 0.00390625, %v287_v11 }
  0xd2   :  { %318 = vxpose.xlu0.b32.cont [14/16] (narrow) %v302_v9, 8 }
  0xd3   :  { %v351_v13 = vld [vmem:[#allocation3 + $0x68] sm:$0xff]  ;;  %v288_v14 = vld [vmem:[#allocation2 + $0x78] sm:$0xff] }
  0xd4   :  { %367 = vxpose.xlu1.b32.cont [14/16] (narrow) %v351_v13, 8  ;;  %v304_v15 = vmul.f32 0.00390625, %v288_v14 }
  0xd6   :  { %319 = vxpose.xlu0.b32.cont [15/16] (narrow) %v303_v12, 8 }
  0xd7   :  { %v352_v16 = vld [vmem:[#allocation3 + $0x70] sm:$0xff]  ;;  %v353_v17 = vld [vmem:[#allocation3 + $0x78] sm:$0xff] }
  0xd8   :  { %368 = vxpose.xlu1.b32.cont [15/16] (narrow) %v352_v16, 8 }
  0xda   :  { %320 = vxpose.xlu0.b32.end [16/16] (narrow) %v304_v15, 8 }
  0xdc   :  { %369 = vxpose.xlu1.b32.end [16/16] (narrow) %v353_v17, 8 }
 0x11e   :  { %v321_v18 = vpop.trf.xlu0 }
 0x11f   :  { %337 = vst [vmem:[%s572_s1] sm:$0x1] %v321_v18 }
 0x120   :  { %v370_v19 = vpop.trf.xlu1 }
 0x121   :  { %386 = vst [vmem:[%s572_s1 + $0x1] sm:$0x1] %v370_v19 }

</bundles_post_ra>
